<compile_context>
chip_gen: v7x
topology: tpu7x:2x2x1
jax: 0.10.0
libtpu: 0.0.40
codegen_flags: <defaults>
</compile_context>

<pallas_src>
import jax
import jax.numpy as jnp
from jax import lax
from jax.experimental import pallas as pl
from jax.experimental.pallas import tpu as pltpu


def double_conv(x_nchw, w1, b1, w2, b2, *, b_blk=None):
    """x_nchw: (N, Cin, H, W) f32; w*: OIHW (Cout, Cin|Cout, 3, 3); b*: (Cout,)."""
    N, Cin, H, W = x_nchw.shape
    Cout = w1.shape[0]
    P = H * W                                           # flat pixel count per image

    if b_blk is None:                                   # images per grid step
        b_blk = next(c for c in (8, 4, 2, 1) if N % c == 0)

    # ---------------- wrapper-side prep: free reshapes + tiny constants ----------------
    x_flat = x_nchw.reshape(N, Cin, P).astype(jnp.float32)          # free (NCHW is contiguous)

    # OIHW -> (o, ky, kx, i) -> (o, (ky*3+kx)*C + i): matches the col row order below.
    w1_mat = jnp.transpose(w1, (0, 2, 3, 1)).reshape(Cout, 9 * Cin).astype(jnp.float32)
    w2_mat = jnp.transpose(w2, (0, 2, 3, 1)).reshape(Cout, 9 * Cout).astype(jnp.float32)
    b1_col = b1.reshape(Cout, 1).astype(jnp.float32)
    b2_col = b2.reshape(Cout, 1).astype(jnp.float32)

    # Per-tap validity masks (9, H*W): 1 where tap (dy,dx) stays inside the image,
    # 0 where the PyTorch conv would have read a padding zero.  Together with the
    # cyclic lane rolls below this reproduces zero-padding exactly.
    yy, xx = jnp.meshgrid(jnp.arange(H), jnp.arange(W), indexing="ij")
    masks = jnp.stack(
        [((yy + dy >= 0) & (yy + dy < H) & (xx + dx >= 0) & (xx + dx < W)).reshape(P)
         for dy in (-1, 0, 1) for dx in (-1, 0, 1)],
        axis=0,
    ).astype(jnp.float32)                                            # (9, P)

    # ------------------------------------ kernel ---------------------------------------
    def kernel(x_ref, w1_ref, b1_ref, w2_ref, b2_ref, m_ref, out_ref):
        # x_ref:(B,Cin,P)  w1_ref:(Cout,9Cin)  b1_ref:(Cout,1)  w2_ref:(Cout,9Cout)
        # b2_ref:(Cout,1)  m_ref:(9,P)  out_ref:(B,Cout,P)
        msk = m_ref[...]                                             # (9, P), resident

        def conv3x3_relu(x, w_ref, bias_ref):
            # x: (C, P) channel-major flat image.  Build the 9-tap im2col with lane
            # rolls + edge masks, then one fused MXU dot for all taps.
            taps = []
            t = 0
            for dy in (-1, 0, 1):
                for dx in (-1, 0, 1):
                    center = (dy == 0 and dx == 0)
                    shift = (-(dy * W + dx)) % P                     # static
                    v = x if shift == 0 else pltpu.roll(x, shift=shift, axis=1)
                    if not center:                                   # center mask == 1
                        v = v * msk[t:t + 1, :]                      # zero out-of-image taps
                    taps.append(v)
                    t += 1
            col = jnp.concatenate(taps, axis=0)                      # (9*C, P)
            h = jnp.dot(w_ref[...], col, preferred_element_type=jnp.float32)
            return jnp.maximum(h + bias_ref[...], 0.0)               # (Cout, P)

        for b in range(b_blk):                                       # static unroll
            h1 = conv3x3_relu(x_ref[b], w1_ref, b1_ref)
            h2 = conv3x3_relu(h1, w2_ref, b2_ref)
            out_ref[b] = h2.astype(out_ref.dtype)                    # lane-dense store (P lanes)

    out_flat = pl.pallas_call(
        kernel,
        out_shape=jax.ShapeDtypeStruct((N, Cout, P), jnp.float32),
        grid=(N // b_blk,),
        in_specs=[
            pl.BlockSpec((b_blk, Cin, P), lambda n: (n, 0, 0)),
            pl.BlockSpec((Cout, 9 * Cin), lambda n: (0, 0)),    # constant index_maps:
            pl.BlockSpec((Cout, 1), lambda n: (0, 0)),          # weights / biases / masks
            pl.BlockSpec((Cout, 9 * Cout), lambda n: (0, 0)),   # DMA'd once, stay resident
            pl.BlockSpec((Cout, 1), lambda n: (0, 0)),
            pl.BlockSpec((9, P), lambda n: (0, 0)),
        ],
        out_specs=pl.BlockSpec((b_blk, Cout, P), lambda n: (n, 0, 0)),
        compiler_params=pltpu.CompilerParams(
            dimension_semantics=("parallel",),          # batch blocks are independent
            vmem_limit_bytes=32 * 1024 * 1024,          # explicit budget (usage << this)
        ),
    )(x_flat, w1_mat, b1_col, w2_mat, b2_col, masks)

    return out_flat.reshape(N, Cout, H, W)              # free: same HBM byte layout


def ref_double_conv(x, w1, b1, w2, b2):
    """Pure-JAX reference (matches PyTorch Conv2d semantics, NCHW/OIHW)."""
    dn = lax.conv_dimension_numbers(x.shape, w1.shape, ("NCHW", "OIHW", "NCHW"))
    y = lax.conv_general_dilated(x, w1, (1, 1), ((1, 1), (1, 1)),
                                 dimension_numbers=dn, precision=lax.Precision.HIGHEST)
    y = jnp.maximum(y + b1[None, :, None, None], 0.0)
    y = lax.conv_general_dilated(y, w2, (1, 1), ((1, 1), (1, 1)),
                                 dimension_numbers=dn, precision=lax.Precision.HIGHEST)
    return jnp.maximum(y + b2[None, :, None, None], 0.0)


if __name__ == "__main__":
    key = jax.random.PRNGKey(0)
    k_x, k_w1, k_b1, k_w2, k_b2 = jax.random.split(key, 5)

    N, Cin, Cout, H, W = 2, 4, 8, 16, 16
    x = jax.random.normal(k_x, (N, Cin, H, W), jnp.float32)
    w1 = jax.random.normal(k_w1, (Cout, Cin, 3, 3), jnp.float32) * 0.1
    b1 = jax.random.normal(k_b1, (Cout,), jnp.float32) * 0.1
    w2 = jax.random.normal(k_w2, (Cout, Cout, 3, 3), jnp.float32) * 0.1
    b2 = jax.random.normal(k_b2, (Cout,), jnp.float32) * 0.1

    out = double_conv(x, w1, b1, w2, b2)
    out = jax.block_until_ready(out)

    ref = jax.block_until_ready(ref_double_conv(x, w1, b1, w2, b2))
    assert out.shape == (N, Cout, H, W)
    assert jnp.allclose(out, ref, atol=1e-4, rtol=1e-4), "mismatch vs reference"

    print("KERNEL_OK")
</pallas_src>

<mosaic_0001>
module attributes {stable_mosaic.version = 11 : i64} {
  func.func @kernel(%arg0: i32, %arg1: memref<2x4x256xf32, #tpu.memory_space<vmem>>, %arg2: memref<8x36xf32, #tpu.memory_space<vmem>>, %arg3: memref<8x1xf32, #tpu.memory_space<vmem>>, %arg4: memref<8x72xf32, #tpu.memory_space<vmem>>, %arg5: memref<8x1xf32, #tpu.memory_space<vmem>>, %arg6: memref<9x256xf32, #tpu.memory_space<vmem>>, %arg7: memref<2x8x256xf32, #tpu.memory_space<vmem>>) attributes {dimension_semantics = [#tpu.dimension_semantics<parallel>], iteration_bounds = array<i64: 1>, scalar_prefetch = 0 : i64, scratch_operands = 0 : i64, tpu.core_type = #tpu.core_type<tc>, window_params = [{transform_indices = @transform_0, window_bounds = array<i64: 2, 4, 256>}, {pipeline_mode = #tpu.pipeline_mode<synchronous>, transform_indices = @transform_1, window_bounds = array<i64: 8, 36>}, {pipeline_mode = #tpu.pipeline_mode<synchronous>, transform_indices = @transform_2, window_bounds = array<i64: 8, 1>}, {pipeline_mode = #tpu.pipeline_mode<synchronous>, transform_indices = @transform_3, window_bounds = array<i64: 8, 72>}, {pipeline_mode = #tpu.pipeline_mode<synchronous>, transform_indices = @transform_4, window_bounds = array<i64: 8, 1>}, {pipeline_mode = #tpu.pipeline_mode<synchronous>, transform_indices = @transform_5, window_bounds = array<i64: 9, 256>}, {transform_indices = @transform_6, window_bounds = array<i64: 2, 8, 256>}]} {
    %c0 = arith.constant 0 : index
    %c0_0 = arith.constant 0 : index
    %0 = vector.load %arg6[%c0, %c0_0] : memref<9x256xf32, #tpu.memory_space<vmem>>, vector<9x256xf32>
    %c0_1 = arith.constant 0 : index
    %c0_2 = arith.constant 0 : index
    %c0_3 = arith.constant 0 : index
    %1 = vector.load %arg1[%c0_1, %c0_2, %c0_3] : memref<2x4x256xf32, #tpu.memory_space<vmem>>, vector<1x4x256xf32>
    %2 = vector.shape_cast %1 : vector<1x4x256xf32> to vector<4x256xf32>
    %c17_i32 = arith.constant 17 : i32
    %3 = tpu.dynamic_rotate %2 by %c17_i32 dim 1 : vector<4x256xf32>, i32 -> vector<4x256xf32>
    %4 = vector.extract_strided_slice %0 {offsets = [0, 0], sizes = [1, 256], strides = [1, 1]} : vector<9x256xf32> to vector<1x256xf32>
    %5 = vector.broadcast %4 : vector<1x256xf32> to vector<4x256xf32>
    %6 = arith.mulf %3, %5 : vector<4x256xf32>
    %c16_i32 = arith.constant 16 : i32
    %7 = tpu.dynamic_rotate %2 by %c16_i32 dim 1 : vector<4x256xf32>, i32 -> vector<4x256xf32>
    %8 = vector.extract_strided_slice %0 {offsets = [1, 0], sizes = [1, 256], strides = [1, 1]} : vector<9x256xf32> to vector<1x256xf32>
    %9 = vector.broadcast %8 : vector<1x256xf32> to vector<4x256xf32>
    %10 = arith.mulf %7, %9 : vector<4x256xf32>
    %c15_i32 = arith.constant 15 : i32
    %11 = tpu.dynamic_rotate %2 by %c15_i32 dim 1 : vector<4x256xf32>, i32 -> vector<4x256xf32>
    %12 = vector.extract_strided_slice %0 {offsets = [2, 0], sizes = [1, 256], strides = [1, 1]} : vector<9x256xf32> to vector<1x256xf32>
    %13 = vector.broadcast %12 : vector<1x256xf32> to vector<4x256xf32>
    %14 = arith.mulf %11, %13 : vector<4x256xf32>
    %c1_i32 = arith.constant 1 : i32
    %15 = tpu.dynamic_rotate %2 by %c1_i32 dim 1 : vector<4x256xf32>, i32 -> vector<4x256xf32>
    %16 = vector.extract_strided_slice %0 {offsets = [3, 0], sizes = [1, 256], strides = [1, 1]} : vector<9x256xf32> to vector<1x256xf32>
    %17 = vector.broadcast %16 : vector<1x256xf32> to vector<4x256xf32>
    %18 = arith.mulf %15, %17 : vector<4x256xf32>
    %c255_i32 = arith.constant 255 : i32
    %19 = tpu.dynamic_rotate %2 by %c255_i32 dim 1 : vector<4x256xf32>, i32 -> vector<4x256xf32>
    %20 = vector.extract_strided_slice %0 {offsets = [5, 0], sizes = [1, 256], strides = [1, 1]} : vector<9x256xf32> to vector<1x256xf32>
    %21 = vector.broadcast %20 : vector<1x256xf32> to vector<4x256xf32>
    %22 = arith.mulf %19, %21 : vector<4x256xf32>
    %c241_i32 = arith.constant 241 : i32
    %23 = tpu.dynamic_rotate %2 by %c241_i32 dim 1 : vector<4x256xf32>, i32 -> vector<4x256xf32>
    %24 = vector.extract_strided_slice %0 {offsets = [6, 0], sizes = [1, 256], strides = [1, 1]} : vector<9x256xf32> to vector<1x256xf32>
    %25 = vector.broadcast %24 : vector<1x256xf32> to vector<4x256xf32>
    %26 = arith.mulf %23, %25 : vector<4x256xf32>
    %c240_i32 = arith.constant 240 : i32
    %27 = tpu.dynamic_rotate %2 by %c240_i32 dim 1 : vector<4x256xf32>, i32 -> vector<4x256xf32>
    %28 = vector.extract_strided_slice %0 {offsets = [7, 0], sizes = [1, 256], strides = [1, 1]} : vector<9x256xf32> to vector<1x256xf32>
    %29 = vector.broadcast %28 : vector<1x256xf32> to vector<4x256xf32>
    %30 = arith.mulf %27, %29 : vector<4x256xf32>
    %c239_i32 = arith.constant 239 : i32
    %31 = tpu.dynamic_rotate %2 by %c239_i32 dim 1 : vector<4x256xf32>, i32 -> vector<4x256xf32>
    %32 = vector.extract_strided_slice %0 {offsets = [8, 0], sizes = [1, 256], strides = [1, 1]} : vector<9x256xf32> to vector<1x256xf32>
    %33 = vector.broadcast %32 : vector<1x256xf32> to vector<4x256xf32>
    %34 = arith.mulf %31, %33 : vector<4x256xf32>
    %35 = tpu.concatenate %6, %10, %14, %18, %2, %22, %26, %30, %34 in 0 : vector<4x256xf32>, vector<4x256xf32>, vector<4x256xf32>, vector<4x256xf32>, vector<4x256xf32>, vector<4x256xf32>, vector<4x256xf32>, vector<4x256xf32>, vector<4x256xf32> -> vector<36x256xf32>
    %c0_4 = arith.constant 0 : index
    %c0_5 = arith.constant 0 : index
    %36 = vector.load %arg2[%c0_4, %c0_5] : memref<8x36xf32, #tpu.memory_space<vmem>>, vector<8x36xf32>
    %cst = arith.constant dense<0.000000e+00> : vector<8x256xf32>
    %37 = tpu.matmul %36, %35, %cst {dimension_numbers = #tpu.dot_dimension_numbers<[1], [0], [0], [1], [0, 0, 1, 1], [], []>} : vector<8x36xf32>, vector<36x256xf32>, vector<8x256xf32> -> vector<8x256xf32>
    %c0_6 = arith.constant 0 : index
    %c0_7 = arith.constant 0 : index
    %38 = vector.load %arg3[%c0_6, %c0_7] : memref<8x1xf32, #tpu.memory_space<vmem>>, vector<8x1xf32>
    %39 = vector.broadcast %38 : vector<8x1xf32> to vector<8x256xf32>
    %40 = arith.addf %37, %39 : vector<8x256xf32>
    %cst_8 = arith.constant 0.000000e+00 : f32
    %41 = vector.broadcast %cst_8 : f32 to vector<8x256xf32>
    %42 = arith.maximumf %40, %41 : vector<8x256xf32>
    %c17_i32_9 = arith.constant 17 : i32
    %43 = tpu.dynamic_rotate %42 by %c17_i32_9 dim 1 : vector<8x256xf32>, i32 -> vector<8x256xf32>
    %44 = vector.extract_strided_slice %0 {offsets = [0, 0], sizes = [1, 256], strides = [1, 1]} : vector<9x256xf32> to vector<1x256xf32>
    %45 = vector.broadcast %44 : vector<1x256xf32> to vector<8x256xf32>
    %46 = arith.mulf %43, %45 : vector<8x256xf32>
    %c16_i32_10 = arith.constant 16 : i32
    %47 = tpu.dynamic_rotate %42 by %c16_i32_10 dim 1 : vector<8x256xf32>, i32 -> vector<8x256xf32>
    %48 = vector.extract_strided_slice %0 {offsets = [1, 0], sizes = [1, 256], strides = [1, 1]} : vector<9x256xf32> to vector<1x256xf32>
    %49 = vector.broadcast %48 : vector<1x256xf32> to vector<8x256xf32>
    %50 = arith.mulf %47, %49 : vector<8x256xf32>
    %c15_i32_11 = arith.constant 15 : i32
    %51 = tpu.dynamic_rotate %42 by %c15_i32_11 dim 1 : vector<8x256xf32>, i32 -> vector<8x256xf32>
    %52 = vector.extract_strided_slice %0 {offsets = [2, 0], sizes = [1, 256], strides = [1, 1]} : vector<9x256xf32> to vector<1x256xf32>
    %53 = vector.broadcast %52 : vector<1x256xf32> to vector<8x256xf32>
    %54 = arith.mulf %51, %53 : vector<8x256xf32>
    %c1_i32_12 = arith.constant 1 : i32
    %55 = tpu.dynamic_rotate %42 by %c1_i32_12 dim 1 : vector<8x256xf32>, i32 -> vector<8x256xf32>
    %56 = vector.extract_strided_slice %0 {offsets = [3, 0], sizes = [1, 256], strides = [1, 1]} : vector<9x256xf32> to vector<1x256xf32>
    %57 = vector.broadcast %56 : vector<1x256xf32> to vector<8x256xf32>
    %58 = arith.mulf %55, %57 : vector<8x256xf32>
    %c255_i32_13 = arith.constant 255 : i32
    %59 = tpu.dynamic_rotate %42 by %c255_i32_13 dim 1 : vector<8x256xf32>, i32 -> vector<8x256xf32>
    %60 = vector.extract_strided_slice %0 {offsets = [5, 0], sizes = [1, 256], strides = [1, 1]} : vector<9x256xf32> to vector<1x256xf32>
    %61 = vector.broadcast %60 : vector<1x256xf32> to vector<8x256xf32>
    %62 = arith.mulf %59, %61 : vector<8x256xf32>
    %c241_i32_14 = arith.constant 241 : i32
    %63 = tpu.dynamic_rotate %42 by %c241_i32_14 dim 1 : vector<8x256xf32>, i32 -> vector<8x256xf32>
    %64 = vector.extract_strided_slice %0 {offsets = [6, 0], sizes = [1, 256], strides = [1, 1]} : vector<9x256xf32> to vector<1x256xf32>
    %65 = vector.broadcast %64 : vector<1x256xf32> to vector<8x256xf32>
    %66 = arith.mulf %63, %65 : vector<8x256xf32>
    %c240_i32_15 = arith.constant 240 : i32
    %67 = tpu.dynamic_rotate %42 by %c240_i32_15 dim 1 : vector<8x256xf32>, i32 -> vector<8x256xf32>
    %68 = vector.extract_strided_slice %0 {offsets = [7, 0], sizes = [1, 256], strides = [1, 1]} : vector<9x256xf32> to vector<1x256xf32>
    %69 = vector.broadcast %68 : vector<1x256xf32> to vector<8x256xf32>
    %70 = arith.mulf %67, %69 : vector<8x256xf32>
    %c239_i32_16 = arith.constant 239 : i32
    %71 = tpu.dynamic_rotate %42 by %c239_i32_16 dim 1 : vector<8x256xf32>, i32 -> vector<8x256xf32>
    %72 = vector.extract_strided_slice %0 {offsets = [8, 0], sizes = [1, 256], strides = [1, 1]} : vector<9x256xf32> to vector<1x256xf32>
    %73 = vector.broadcast %72 : vector<1x256xf32> to vector<8x256xf32>
    %74 = arith.mulf %71, %73 : vector<8x256xf32>
    %75 = tpu.concatenate %46, %50, %54, %58, %42, %62, %66, %70, %74 in 0 : vector<8x256xf32>, vector<8x256xf32>, vector<8x256xf32>, vector<8x256xf32>, vector<8x256xf32>, vector<8x256xf32>, vector<8x256xf32>, vector<8x256xf32>, vector<8x256xf32> -> vector<72x256xf32>
    %c0_17 = arith.constant 0 : index
    %c0_18 = arith.constant 0 : index
    %76 = vector.load %arg4[%c0_17, %c0_18] : memref<8x72xf32, #tpu.memory_space<vmem>>, vector<8x72xf32>
    %cst_19 = arith.constant dense<0.000000e+00> : vector<8x256xf32>
    %77 = tpu.matmul %76, %75, %cst_19 {dimension_numbers = #tpu.dot_dimension_numbers<[1], [0], [0], [1], [0, 0, 1, 1], [], []>} : vector<8x72xf32>, vector<72x256xf32>, vector<8x256xf32> -> vector<8x256xf32>
    %c0_20 = arith.constant 0 : index
    %c0_21 = arith.constant 0 : index
    %78 = vector.load %arg5[%c0_20, %c0_21] : memref<8x1xf32, #tpu.memory_space<vmem>>, vector<8x1xf32>
    %79 = vector.broadcast %78 : vector<8x1xf32> to vector<8x256xf32>
    %80 = arith.addf %77, %79 : vector<8x256xf32>
    %cst_22 = arith.constant 0.000000e+00 : f32
    %81 = vector.broadcast %cst_22 : f32 to vector<8x256xf32>
    %82 = arith.maximumf %80, %81 : vector<8x256xf32>
    %c0_23 = arith.constant 0 : index
    %c0_24 = arith.constant 0 : index
    %c0_25 = arith.constant 0 : index
    %83 = vector.load %arg7[%c0_23, %c0_24, %c0_25] : memref<2x8x256xf32, #tpu.memory_space<vmem>>, vector<1x8x256xf32>
    %84 = vector.shape_cast %83 : vector<1x8x256xf32> to vector<8x256xf32>
    %85 = vector.shape_cast %82 : vector<8x256xf32> to vector<1x8x256xf32>
    tpu.vector_store %arg7[%c0_23, %c0_24, %c0_25], %85 {strides = array<i32>} : memref<2x8x256xf32, #tpu.memory_space<vmem>>, vector<1x8x256xf32>,
    %c1 = arith.constant 1 : index
    %c0_26 = arith.constant 0 : index
    %c0_27 = arith.constant 0 : index
    %86 = vector.load %arg1[%c1, %c0_26, %c0_27] : memref<2x4x256xf32, #tpu.memory_space<vmem>>, vector<1x4x256xf32>
    %87 = vector.shape_cast %86 : vector<1x4x256xf32> to vector<4x256xf32>
    %c17_i32_28 = arith.constant 17 : i32
    %88 = tpu.dynamic_rotate %87 by %c17_i32_28 dim 1 : vector<4x256xf32>, i32 -> vector<4x256xf32>
    %89 = vector.extract_strided_slice %0 {offsets = [0, 0], sizes = [1, 256], strides = [1, 1]} : vector<9x256xf32> to vector<1x256xf32>
    %90 = vector.broadcast %89 : vector<1x256xf32> to vector<4x256xf32>
    %91 = arith.mulf %88, %90 : vector<4x256xf32>
    %c16_i32_29 = arith.constant 16 : i32
    %92 = tpu.dynamic_rotate %87 by %c16_i32_29 dim 1 : vector<4x256xf32>, i32 -> vector<4x256xf32>
    %93 = vector.extract_strided_slice %0 {offsets = [1, 0], sizes = [1, 256], strides = [1, 1]} : vector<9x256xf32> to vector<1x256xf32>
    %94 = vector.broadcast %93 : vector<1x256xf32> to vector<4x256xf32>
    %95 = arith.mulf %92, %94 : vector<4x256xf32>
    %c15_i32_30 = arith.constant 15 : i32
    %96 = tpu.dynamic_rotate %87 by %c15_i32_30 dim 1 : vector<4x256xf32>, i32 -> vector<4x256xf32>
    %97 = vector.extract_strided_slice %0 {offsets = [2, 0], sizes = [1, 256], strides = [1, 1]} : vector<9x256xf32> to vector<1x256xf32>
    %98 = vector.broadcast %97 : vector<1x256xf32> to vector<4x256xf32>
    %99 = arith.mulf %96, %98 : vector<4x256xf32>
    %c1_i32_31 = arith.constant 1 : i32
    %100 = tpu.dynamic_rotate %87 by %c1_i32_31 dim 1 : vector<4x256xf32>, i32 -> vector<4x256xf32>
    %101 = vector.extract_strided_slice %0 {offsets = [3, 0], sizes = [1, 256], strides = [1, 1]} : vector<9x256xf32> to vector<1x256xf32>
    %102 = vector.broadcast %101 : vector<1x256xf32> to vector<4x256xf32>
    %103 = arith.mulf %100, %102 : vector<4x256xf32>
    %c255_i32_32 = arith.constant 255 : i32
    %104 = tpu.dynamic_rotate %87 by %c255_i32_32 dim 1 : vector<4x256xf32>, i32 -> vector<4x256xf32>
    %105 = vector.extract_strided_slice %0 {offsets = [5, 0], sizes = [1, 256], strides = [1, 1]} : vector<9x256xf32> to vector<1x256xf32>
    %106 = vector.broadcast %105 : vector<1x256xf32> to vector<4x256xf32>
    %107 = arith.mulf %104, %106 : vector<4x256xf32>
    %c241_i32_33 = arith.constant 241 : i32
    %108 = tpu.dynamic_rotate %87 by %c241_i32_33 dim 1 : vector<4x256xf32>, i32 -> vector<4x256xf32>
    %109 = vector.extract_strided_slice %0 {offsets = [6, 0], sizes = [1, 256], strides = [1, 1]} : vector<9x256xf32> to vector<1x256xf32>
    %110 = vector.broadcast %109 : vector<1x256xf32> to vector<4x256xf32>
    %111 = arith.mulf %108, %110 : vector<4x256xf32>
    %c240_i32_34 = arith.constant 240 : i32
    %112 = tpu.dynamic_rotate %87 by %c240_i32_34 dim 1 : vector<4x256xf32>, i32 -> vector<4x256xf32>
    %113 = vector.extract_strided_slice %0 {offsets = [7, 0], sizes = [1, 256], strides = [1, 1]} : vector<9x256xf32> to vector<1x256xf32>
    %114 = vector.broadcast %113 : vector<1x256xf32> to vector<4x256xf32>
    %115 = arith.mulf %112, %114 : vector<4x256xf32>
    %c239_i32_35 = arith.constant 239 : i32
    %116 = tpu.dynamic_rotate %87 by %c239_i32_35 dim 1 : vector<4x256xf32>, i32 -> vector<4x256xf32>
    %117 = vector.extract_strided_slice %0 {offsets = [8, 0], sizes = [1, 256], strides = [1, 1]} : vector<9x256xf32> to vector<1x256xf32>
    %118 = vector.broadcast %117 : vector<1x256xf32> to vector<4x256xf32>
    %119 = arith.mulf %116, %118 : vector<4x256xf32>
    %120 = tpu.concatenate %91, %95, %99, %103, %87, %107, %111, %115, %119 in 0 : vector<4x256xf32>, vector<4x256xf32>, vector<4x256xf32>, vector<4x256xf32>, vector<4x256xf32>, vector<4x256xf32>, vector<4x256xf32>, vector<4x256xf32>, vector<4x256xf32> -> vector<36x256xf32>
    %c0_36 = arith.constant 0 : index
    %c0_37 = arith.constant 0 : index
    %121 = vector.load %arg2[%c0_36, %c0_37] : memref<8x36xf32, #tpu.memory_space<vmem>>, vector<8x36xf32>
    %cst_38 = arith.constant dense<0.000000e+00> : vector<8x256xf32>
    %122 = tpu.matmul %121, %120, %cst_38 {dimension_numbers = #tpu.dot_dimension_numbers<[1], [0], [0], [1], [0, 0, 1, 1], [], []>} : vector<8x36xf32>, vector<36x256xf32>, vector<8x256xf32> -> vector<8x256xf32>
    %c0_39 = arith.constant 0 : index
    %c0_40 = arith.constant 0 : index
    %123 = vector.load %arg3[%c0_39, %c0_40] : memref<8x1xf32, #tpu.memory_space<vmem>>, vector<8x1xf32>
    %124 = vector.broadcast %123 : vector<8x1xf32> to vector<8x256xf32>
    %125 = arith.addf %122, %124 : vector<8x256xf32>
    %cst_41 = arith.constant 0.000000e+00 : f32
    %126 = vector.broadcast %cst_41 : f32 to vector<8x256xf32>
    %127 = arith.maximumf %125, %126 : vector<8x256xf32>
    %c17_i32_42 = arith.constant 17 : i32
    %128 = tpu.dynamic_rotate %127 by %c17_i32_42 dim 1 : vector<8x256xf32>, i32 -> vector<8x256xf32>
    %129 = vector.extract_strided_slice %0 {offsets = [0, 0], sizes = [1, 256], strides = [1, 1]} : vector<9x256xf32> to vector<1x256xf32>
    %130 = vector.broadcast %129 : vector<1x256xf32> to vector<8x256xf32>
    %131 = arith.mulf %128, %130 : vector<8x256xf32>
    %c16_i32_43 = arith.constant 16 : i32
    %132 = tpu.dynamic_rotate %127 by %c16_i32_43 dim 1 : vector<8x256xf32>, i32 -> vector<8x256xf32>
    %133 = vector.extract_strided_slice %0 {offsets = [1, 0], sizes = [1, 256], strides = [1, 1]} : vector<9x256xf32> to vector<1x256xf32>
    %134 = vector.broadcast %133 : vector<1x256xf32> to vector<8x256xf32>
    %135 = arith.mulf %132, %134 : vector<8x256xf32>
    %c15_i32_44 = arith.constant 15 : i32
    %136 = tpu.dynamic_rotate %127 by %c15_i32_44 dim 1 : vector<8x256xf32>, i32 -> vector<8x256xf32>
    %137 = vector.extract_strided_slice %0 {offsets = [2, 0], sizes = [1, 256], strides = [1, 1]} : vector<9x256xf32> to vector<1x256xf32>
    %138 = vector.broadcast %137 : vector<1x256xf32> to vector<8x256xf32>
    %139 = arith.mulf %136, %138 : vector<8x256xf32>
    %c1_i32_45 = arith.constant 1 : i32
    %140 = tpu.dynamic_rotate %127 by %c1_i32_45 dim 1 : vector<8x256xf32>, i32 -> vector<8x256xf32>
    %141 = vector.extract_strided_slice %0 {offsets = [3, 0], sizes = [1, 256], strides = [1, 1]} : vector<9x256xf32> to vector<1x256xf32>
    %142 = vector.broadcast %141 : vector<1x256xf32> to vector<8x256xf32>
    %143 = arith.mulf %140, %142 : vector<8x256xf32>
    %c255_i32_46 = arith.constant 255 : i32
    %144 = tpu.dynamic_rotate %127 by %c255_i32_46 dim 1 : vector<8x256xf32>, i32 -> vector<8x256xf32>
    %145 = vector.extract_strided_slice %0 {offsets = [5, 0], sizes = [1, 256], strides = [1, 1]} : vector<9x256xf32> to vector<1x256xf32>
    %146 = vector.broadcast %145 : vector<1x256xf32> to vector<8x256xf32>
    %147 = arith.mulf %144, %146 : vector<8x256xf32>
    %c241_i32_47 = arith.constant 241 : i32
    %148 = tpu.dynamic_rotate %127 by %c241_i32_47 dim 1 : vector<8x256xf32>, i32 -> vector<8x256xf32>
    %149 = vector.extract_strided_slice %0 {offsets = [6, 0], sizes = [1, 256], strides = [1, 1]} : vector<9x256xf32> to vector<1x256xf32>
    %150 = vector.broadcast %149 : vector<1x256xf32> to vector<8x256xf32>
    %151 = arith.mulf %148, %150 : vector<8x256xf32>
    %c240_i32_48 = arith.constant 240 : i32
    %152 = tpu.dynamic_rotate %127 by %c240_i32_48 dim 1 : vector<8x256xf32>, i32 -> vector<8x256xf32>
    %153 = vector.extract_strided_slice %0 {offsets = [7, 0], sizes = [1, 256], strides = [1, 1]} : vector<9x256xf32> to vector<1x256xf32>
    %154 = vector.broadcast %153 : vector<1x256xf32> to vector<8x256xf32>
    %155 = arith.mulf %152, %154 : vector<8x256xf32>
    %c239_i32_49 = arith.constant 239 : i32
    %156 = tpu.dynamic_rotate %127 by %c239_i32_49 dim 1 : vector<8x256xf32>, i32 -> vector<8x256xf32>
    %157 = vector.extract_strided_slice %0 {offsets = [8, 0], sizes = [1, 256], strides = [1, 1]} : vector<9x256xf32> to vector<1x256xf32>
    %158 = vector.broadcast %157 : vector<1x256xf32> to vector<8x256xf32>
    %159 = arith.mulf %156, %158 : vector<8x256xf32>
    %160 = tpu.concatenate %131, %135, %139, %143, %127, %147, %151, %155, %159 in 0 : vector<8x256xf32>, vector<8x256xf32>, vector<8x256xf32>, vector<8x256xf32>, vector<8x256xf32>, vector<8x256xf32>, vector<8x256xf32>, vector<8x256xf32>, vector<8x256xf32> -> vector<72x256xf32>
    %c0_50 = arith.constant 0 : index
    %c0_51 = arith.constant 0 : index
    %161 = vector.load %arg4[%c0_50, %c0_51] : memref<8x72xf32, #tpu.memory_space<vmem>>, vector<8x72xf32>
    %cst_52 = arith.constant dense<0.000000e+00> : vector<8x256xf32>
    %162 = tpu.matmul %161, %160, %cst_52 {dimension_numbers = #tpu.dot_dimension_numbers<[1], [0], [0], [1], [0, 0, 1, 1], [], []>} : vector<8x72xf32>, vector<72x256xf32>, vector<8x256xf32> -> vector<8x256xf32>
    %c0_53 = arith.constant 0 : index
    %c0_54 = arith.constant 0 : index
    %163 = vector.load %arg5[%c0_53, %c0_54] : memref<8x1xf32, #tpu.memory_space<vmem>>, vector<8x1xf32>
    %164 = vector.broadcast %163 : vector<8x1xf32> to vector<8x256xf32>
    %165 = arith.addf %162, %164 : vector<8x256xf32>
    %cst_55 = arith.constant 0.000000e+00 : f32
    %166 = vector.broadcast %cst_55 : f32 to vector<8x256xf32>
    %167 = arith.maximumf %165, %166 : vector<8x256xf32>
    %c1_56 = arith.constant 1 : index
    %c0_57 = arith.constant 0 : index
    %c0_58 = arith.constant 0 : index
    %168 = vector.load %arg7[%c1_56, %c0_57, %c0_58] : memref<2x8x256xf32, #tpu.memory_space<vmem>>, vector<1x8x256xf32>
    %169 = vector.shape_cast %168 : vector<1x8x256xf32> to vector<8x256xf32>
    %170 = vector.shape_cast %167 : vector<8x256xf32> to vector<1x8x256xf32>
    tpu.vector_store %arg7[%c1_56, %c0_57, %c0_58], %170 {strides = array<i32>} : memref<2x8x256xf32, #tpu.memory_space<vmem>>, vector<1x8x256xf32>,
    return
  }
  func.func @transform_0(%arg0: i32) -> (i32, i32, i32) {
    %c0_i32 = arith.constant 0 : i32
    %c0_i32_0 = arith.constant 0 : i32
    %c0_i32_1 = arith.constant 0 : i32
    return %arg0, %c0_i32, %c0_i32_0 : i32, i32, i32
  }
  func.func @transform_1(%arg0: i32) -> (i32, i32) {
    %c0_i32 = arith.constant 0 : i32
    %c0_i32_0 = arith.constant 0 : i32
    %c0_i32_1 = arith.constant 0 : i32
    return %c0_i32, %c0_i32_0 : i32, i32
  }
  func.func @transform_2(%arg0: i32) -> (i32, i32) {
    %c0_i32 = arith.constant 0 : i32
    %c0_i32_0 = arith.constant 0 : i32
    %c0_i32_1 = arith.constant 0 : i32
    return %c0_i32, %c0_i32_0 : i32, i32
  }
  func.func @transform_3(%arg0: i32) -> (i32, i32) {
    %c0_i32 = arith.constant 0 : i32
    %c0_i32_0 = arith.constant 0 : i32
    %c0_i32_1 = arith.constant 0 : i32
    return %c0_i32, %c0_i32_0 : i32, i32
  }
  func.func @transform_4(%arg0: i32) -> (i32, i32) {
    %c0_i32 = arith.constant 0 : i32
    %c0_i32_0 = arith.constant 0 : i32
    %c0_i32_1 = arith.constant 0 : i32
    return %c0_i32, %c0_i32_0 : i32, i32
  }
  func.func @transform_5(%arg0: i32) -> (i32, i32) {
    %c0_i32 = arith.constant 0 : i32
    %c0_i32_0 = arith.constant 0 : i32
    %c0_i32_1 = arith.constant 0 : i32
    return %c0_i32, %c0_i32_0 : i32, i32
  }
  func.func @transform_6(%arg0: i32) -> (i32, i32, i32) {
    %c0_i32 = arith.constant 0 : i32
    %c0_i32_0 = arith.constant 0 : i32
    %c0_i32_1 = arith.constant 0 : i32
    return %arg0, %c0_i32, %c0_i32_0 : i32, i32, i32
  }
}

</mosaic_0001>

<bundles_post_ra>
// kernel: tpu_custom_call.1
= control target key start
LH: loop header
LB: loop body
LE: loop exit
PB: predicated region body
PF: predicated region fallthrough
CT: control target
= control target key end

     0   :  { %11 = vsyncpa [#allocation3], 0  ;;  %s1590_s0 = inlined_call_operand.hbm [shape: f32[2,4,256], index: 0, kind: input, shape index: {}]   ;;  %s1591_s1 = inlined_call_operand.hbm [shape: f32[8,36], index: 1, kind: input, shape index: {}]   ;;  %s1592_s2 = inlined_call_operand.vmem [shape: f32[8,1], index: 2, kind: input, shape index: {}]   ;;  %s1593_s3 = inlined_call_operand.hbm [shape: f32[8,72], index: 3, kind: input, shape index: {}]   ;;  %s1594_s4 = inlined_call_operand.vmem [shape: f32[8,1], index: 4, kind: input, shape index: {}]   ;;  %s1595_s5 = inlined_call_operand.vmem [shape: f32[9,256], index: 5, kind: input, shape index: {}]   ;;  %s1596_s6 = inlined_call_operand.hbm [shape: f32[2,8,256], index: 6, kind: output, shape index: {}]  }
   0x1   :  { %12 = vsyncpa [#allocation6], 0 }
   0x2   :  { %13 = vsyncpa [#allocation4], 0  ;;  %s1011_s21 = smov [#allocation5]   ;;  %s1012_s23 = smov [#allocation2]  }
   0x3   :  { %s32_s22 = sshll.u32 %s1011_s21, 4  ;;  %s19_s24 = sshll.u32 %s1012_s23, 4  ;;  %s33_s22 = int_to_ptr.vmem [resolvable:$true] %s32_s22  ;;  %s1063_s24 = int_to_ptr.vmem [resolvable:$true] %s19_s24 }
   0x4   :  { %s917_s27 = scalar_lea.hbm %s1591_s1, 128 }
   0x5   :  { %p918_p0 = scmp.ne.s32.totalorder %s1591_s1, %s917_s27  ;;  %p921_p1 = scmp.lt.u32.totalorder %s917_s27, %s1591_s1 }
   0x7   :  { %p923_p2 = pnand %p921_p1, %p918_p0 }
   0x9   :  { %926 = shalt.err (!%p923_p2)
}
   0xa   :  { %s927_s8 = scalar_lea.vmem %s33_s22, 128  ;;  %p932_p4 = scmp.lt.s32.totalorder %s33_s22, %s33_s22 }
   0xb   :  { %p928_p3 = scmp.ne.s32.totalorder %s33_s22, %s927_s8  ;;  %p933_p5 = scmp.lt.s32.totalorder %s927_s8, %s927_s8 }
   0xd   :  { %p934_p6 = por %p933_p5, %p932_p4 }
   0xf   :  { %p935_p7 = pnand %p934_p6, %p928_p3 }
  0x11   :  { %938 = shalt.err (!%p935_p7)
}
  0x12   :  { %35 = dma.hbm_to_vmem [thread:$0]  %s1591_s1, 128, %s33_s22, [#allocation6]  }
  0x13   :  { %s939_s13 = scalar_lea.hbm %s1590_s0, 256 }
  0x14   :  { %p940_p8 = scmp.ne.s32.totalorder %s1590_s0, %s939_s13  ;;  %p943_p9 = scmp.lt.u32.totalorder %s939_s13, %s1590_s0 }
  0x16   :  { %p945_p10 = pnand %p943_p9, %p940_p8 }
  0x18   :  { %948 = shalt.err (!%p945_p10)
}
  0x19   :  { %s949_s18 = scalar_lea.vmem %s1063_s24, 256  ;;  %p954_p12 = scmp.lt.s32.totalorder %s1063_s24, %s1063_s24 }
  0x1a   :  { %p950_p11 = scmp.ne.s32.totalorder %s1063_s24, %s949_s18  ;;  %p955_p13 = scmp.lt.s32.totalorder %s949_s18, %s949_s18 }
  0x1c   :  { %p956_p0 = por %p955_p13, %p954_p12 }
  0x1e   :  { %p957_p1 = pnand %p956_p0, %p950_p11 }
  0x20   :  { %960 = shalt.err (!%p957_p1)
}
  0x21   :  { %s1013_s1 = smov 128   ;;  %s1014_s19 = smov 8  }
  0x22   :  { %25 = dma.hbm_to_vmem [thread:$0]  %s1590_s0, 256, %s1063_s24, [#allocation3], %s1013_s1, %s1013_s1, %s1014_s19  }
  0x23   :  { %s1015_s22 = smov [#allocation7]   ;;  %s961_s27 = scalar_lea.hbm %s1593_s3, 128 }
  0x24   :  { %s44_s23 = sshll.u32 %s1015_s22, 4  ;;  %p962_p2 = scmp.ne.s32.totalorder %s1593_s3, %s961_s27  ;;  %s45_s23 = int_to_ptr.vmem [resolvable:$true] %s44_s23 }
  0x25   :  { %p965_p3 = scmp.lt.u32.totalorder %s961_s27, %s1593_s3 }
  0x27   :  { %p967_p4 = pnand %p965_p3, %p962_p2 }
  0x29   :  { %970 = shalt.err (!%p967_p4)
}
  0x2a   :  { %s971_s8 = scalar_lea.vmem %s45_s23, 128  ;;  %p976_p6 = scmp.lt.s32.totalorder %s45_s23, %s45_s23 }
  0x2b   :  { %p972_p5 = scmp.ne.s32.totalorder %s45_s23, %s971_s8  ;;  %p977_p7 = scmp.lt.s32.totalorder %s971_s8, %s971_s8 }
  0x2d   :  { %p978_p8 = por %p977_p7, %p976_p6 }
  0x2f   :  { %p979_p9 = pnand %p978_p8, %p972_p5 }
  0x31   :  { %982 = shalt.err (!%p979_p9)
}
  0x32   :  { %47 = dma.hbm_to_vmem [thread:$0]  %s1593_s3, 128, %s45_s23, [#allocation6]  }
  0x33   :  { %1005 = dma.done.wait [#allocation3], 256  }
  0x34   :  { %1006 = vsyncadd [#allocation3], 4294967040 }
  0x35   :  { %1007 = dma.done.wait [#allocation6], 256  }
  0x36   :  { %1008 = vsyncadd [#allocation6], 4294967040  ;;  %v1106_v0 = vld [vmem:[#allocation2] sm:$0xff]  ;;  %s1016_s9 = smov 1   ;;  %s1017_s10 = smov 16   ;;  %v1022_v2 = vmov 0.0   ;;  %v73_v7 = vlaneseq }
  0x37   :  { %122 = vrot.lane.b32.xlu1 %v1106_v0, %s1016_s9  ;;  %88 = vrot.lane.b32.xlu0 %v1106_v0, %s1017_s10  ;;  %v1114_v1 = vcombine.high %v1106_v0, %v1106_v0  ;;  %s1018_s11 = smov 17   ;;  %s1019_s3 = smov 15   ;;  %v1142_v3 = vld [vmem:[#allocation2 + $0x8] sm:$0xff]  ;;  %v1025_v5 = vmov 0   ;;  %v241_v6 = vld [vmem:[%s1592_s2] sm:$0xff]  ;;  %vm231_vm4 = vcmask 1043456  }
  0x38   :  { %s1020_s12 = smov 127   ;;  %s1021_s13 = smov 112   ;;  %321 = vmatprep.mubr.f32.mxu0 %v1022_v2  ;;  %469 = vmatprep.mubr.f32.mxu1 %v1022_v2  ;;  %v1150_v4 = vcombine.high %v1142_v3, %v1142_v3  ;;  %v1187_v8 = vshrl.u32 %v73_v7, 7  ;;  %v1189_v9 = vand.u32 127, %v73_v7  ;;  %v1195_v13 = vld [vmem:[%s1595_s5] sm:$0xff]  ;;  %v1200_v14 = vld [vmem:[%s1595_s5 + $0x8] sm:$0xff] }
  0x39   :  { %s1023_s14 = smov 113   ;;  %s1024_s15 = smov 111   ;;  %913 = vset.pattern.permute.xlu0 %v1025_v5  ;;  %914 = vset.pattern.permute.xlu1 %v1025_v5  ;;  %vm247_vm9 = vcmask 293888   ;;  %vm401_vm10 = vcmask 588800  }
  0x3a   :  { %v131_v12 = vsub.s32 3, %v1187_v8  ;;  %v97_v15 = vsub.s32 1, %v1187_v8  ;;  %vm126_vm0 = vcmp.lt.s32.totalorder %v1189_v9, 1  ;;  %v80_v18 = vsub.s32 0, %v1187_v8 }
  0x3b   :  { %69 = vrot.lane.b32.xlu0 %v1106_v0, %s1018_s11  ;;  %124 = vrot.lane.b32.xlu1 %v1114_v1, %s1016_s9  ;;  %vm92_vm1 = vcmp.lt.s32.totalorder %v1189_v9, 16  ;;  %v114_v21 = vsub.s32 2, %v1187_v8  ;;  %vm75_vm2 = vcmp.lt.s32.totalorder %v1189_v9, 17  ;;  %vm109_vm3 = vcmp.lt.s32.totalorder %v1189_v9, 15 }
  0x3c   :  { %v1206_v19 = vrot.slane %v1195_v13, %v131_v12  ;;  %v1209_v20 = vrot.slane %v1200_v14, %v131_v12  ;;  %v1218_v24 = vrot.slane %v1195_v13, %v97_v15  ;;  %v1221_v25 = vrot.slane %v1200_v14, %v97_v15 }
  0x3d   :  { %v1225_v27 = vrot.slane %v1195_v13, %v80_v18  ;;  %v1228_v28 = vrot.slane %v1200_v14, %v80_v18  ;;  %v1240_v36 = vrot.slane %v1195_v13, %v114_v21  ;;  %v1243_v37 = vrot.slane %v1200_v14, %v114_v21 }
  0x3e   :  { %v148_v40 = vsub.s32 5, %v1187_v8  ;;  %vm143_vm5 = vcmp.lt.s32.totalorder %v1189_v9, 127  ;;  %v182_v45 = vsub.s32 7, %v1187_v8  ;;  %vm177_vm6 = vcmp.lt.s32.totalorder %v1189_v9, 112 }
  0x3f   :  { %71 = vrot.lane.b32.xlu1 %v1114_v1, %s1018_s11  ;;  %90 = vrot.lane.b32.xlu0 %v1114_v1, %s1017_s10  ;;  %vm160_vm7 = vcmp.lt.s32.totalorder %v1189_v9, 113  ;;  %vm194_vm8 = vcmp.lt.s32.totalorder %v1189_v9, 111 }
  0x40   :  { %v1261_v54 = vrot.slane %v1195_v13, %v148_v40  ;;  %v1264_v55 = vrot.slane %v1200_v14, %v148_v40  ;;  %v1276_v7 = vrot.slane %v1195_v13, %v182_v45 }
  0x43   :  { %107 = vrot.lane.b32.xlu1 %v1114_v1, %s1019_s3  ;;  %105 = vrot.lane.b32.xlu0 %v1106_v0, %s1019_s3 }
  0x47   :  { %141 = vrot.lane.b32.xlu1 %v1114_v1, %s1020_s12  ;;  %139 = vrot.lane.b32.xlu0 %v1106_v0, %s1020_s12 }
  0x4b   :  { %175 = vrot.lane.b32.xlu1 %v1114_v1, %s1021_s13  ;;  %173 = vrot.lane.b32.xlu0 %v1106_v0, %s1021_s13 }
  0x4f   :  { %158 = vrot.lane.b32.xlu1 %v1114_v1, %s1023_s14  ;;  %156 = vrot.lane.b32.xlu0 %v1106_v0, %s1023_s14 }
  0x53   :  { %192 = vrot.lane.b32.xlu1 %v1114_v1, %s1024_s15  ;;  %190 = vrot.lane.b32.xlu0 %v1106_v0, %s1024_s15 }
  0x57   :  { %495 = vrot.lane.b32.xlu1 %v1150_v4, %s1017_s10  ;;  %493 = vrot.lane.b32.xlu0 %v1142_v3, %s1017_s10 }
  0x5b   :  { %511 = vrot.lane.b32.xlu1 %v1150_v4, %s1016_s9  ;;  %509 = vrot.lane.b32.xlu0 %v1142_v3, %s1016_s9 }
  0x5f   :  { %487 = vrot.lane.b32.xlu1 %v1150_v4, %s1018_s11  ;;  %485 = vrot.lane.b32.xlu0 %v1142_v3, %s1018_s11 }
  0x63   :  { %503 = vrot.lane.b32.xlu1 %v1150_v4, %s1019_s3  ;;  %501 = vrot.lane.b32.xlu0 %v1142_v3, %s1019_s3 }
  0x67   :  { %519 = vrot.lane.b32.xlu1 %v1150_v4, %s1020_s12  ;;  %517 = vrot.lane.b32.xlu0 %v1142_v3, %s1020_s12 }
  0x6b   :  { %535 = vrot.lane.b32.xlu1 %v1150_v4, %s1021_s13  ;;  %533 = vrot.lane.b32.xlu0 %v1142_v3, %s1021_s13 }
  0x6f   :  { %527 = vrot.lane.b32.xlu1 %v1150_v4, %s1023_s14  ;;  %525 = vrot.lane.b32.xlu0 %v1142_v3, %s1023_s14 }
  0x73   :  { %543 = vrot.lane.b32.xlu1 %v1150_v4, %s1024_s15  ;;  %541 = vrot.lane.b32.xlu0 %v1142_v3, %s1024_s15 }
  0x77   :  { %244 = vperm.xlu0 %913, %v241_v6   ;;  %585 = vperm.xlu1 %914, %v241_v6  }
  0xa9   :  { %v123_v10 = vpop.permute.xlu1 %122  ;;  %v89_v11 = vpop.permute.xlu0 %88 }
  0xad   :  { %v70_v16 = vpop.permute.xlu0 %69  ;;  %v125_v17 = vpop.permute.xlu1 %124 }
  0xae   :  { %v127_v22 = vsel %vm126_vm0, %v123_v10, %v125_v17  ;;  %v128_v23 = vsel %vm126_vm0, %v125_v17, %v123_v10  ;;  %v1279_v10 = vrot.slane %v1200_v14, %v182_v45 }
  0xaf   :  { %v137_v30 = vmul.f32 %v1206_v19, %v128_v23  ;;  %v138_v31 = vmul.f32 %v1209_v20, %v127_v22 }
  0xb1   :  { %v72_v26 = vpop.permute.xlu1 %71  ;;  %v91_v29 = vpop.permute.xlu0 %90  ;;  %v215_v46 = vrot.slane %v137_v30, 4  ;;  %v216_v47 = vrot.slane %v138_v31, 4 }
  0xb2   :  { %v93_v32 = vsel %vm92_vm1, %v89_v11, %v91_v29  ;;  %v94_v33 = vsel %vm92_vm1, %v91_v29, %v89_v11  ;;  %v76_v38 = vsel %vm75_vm2, %v70_v16, %v72_v26  ;;  %v77_v39 = vsel %vm75_vm2, %v72_v26, %v70_v16 }
  0xb3   :  { %v103_v34 = vmul.f32 %v1218_v24, %v94_v33  ;;  %v104_v35 = vmul.f32 %v1221_v25, %v93_v32  ;;  %v86_v50 = vmul.f32 %v1225_v27, %v77_v39  ;;  %v87_v51 = vmul.f32 %v1228_v28, %v76_v38 }
  0xb4   :  { %v165_v11 = vsub.s32 6, %v1187_v8 }
  0xb5   :  { %v209_v41 = vrot.slane %v103_v34, 4  ;;  %v210_v42 = vrot.slane %v104_v35, 4  ;;  %v108_v43 = vpop.permute.xlu1 %107  ;;  %v106_v44 = vpop.permute.xlu0 %105 }
  0xb6   :  { %v110_v48 = vsel %vm109_vm3, %v106_v44, %v108_v43  ;;  %v111_v49 = vsel %vm109_vm3, %v108_v43, %v106_v44  ;;  %v1292_v23 = vrot.slane %v1195_v13, %v165_v11  ;;  %v1295_v26 = vrot.slane %v1200_v14, %v165_v11  ;;  %v1307_v14 = vld [vmem:[%s1595_s5 + $0x18] ss:$0 sm:$0xff] }
  0xb7   :  { %v120_v52 = vmul.f32 %v1240_v36, %v111_v49  ;;  %v121_v53 = vmul.f32 %v1243_v37, %v110_v48  ;;  %v233_v58 = vsel %vm231_vm4, %v87_v51, %v210_v42  ;;  %v232_v60 = vsel %vm231_vm4, %v86_v50, %v209_v41  ;;  %v1321_v50 = vld [vmem:[%s1595_s5 + $0x10] ss:$0 sm:$0xff] }
  0xb9   :  { %v142_v56 = vpop.permute.xlu1 %141  ;;  %v140_v57 = vpop.permute.xlu0 %139  ;;  %v235_v59 = vsel %vm231_vm4, %v121_v53, %v216_v47  ;;  %v234_v61 = vsel %vm231_vm4, %v120_v52, %v215_v46  ;;  %v1327_v53 = vld [vmem:[#allocation5] sm:$0xff] }
  0xba   :  { %v144_v62 = vsel %vm143_vm5, %v140_v57, %v142_v56  ;;  %v145_v63 = vsel %vm143_vm5, %v142_v56, %v140_v57  ;;  %v848_v5 = vpack.c.bf16 %v235_v59, %v233_v58  ;;  %v850_v6 = vpack.c.bf16 %v234_v61, %v232_v60 }
  0xbb   :  { %v154_v12 = vmul.f32 %v1261_v54, %v144_v62  ;;  %v155_v15 = vmul.f32 %v1264_v55, %v145_v63 }
  0xbc   :  { %849 = vmatprep.subr.bf16.mxu0 %v848_v5 }
  0xbd   :  { %v176_v16 = vpop.permute.xlu1 %175  ;;  %v174_v17 = vpop.permute.xlu0 %173  ;;  %851 = vmatpush1.bf16.msra.mxu0 %v850_v6  ;;  %v221_v29 = vrot.slane %v154_v12, 4  ;;  %v222_v30 = vrot.slane %v155_v15, 4 }
  0xbe   :  { %v178_v18 = vsel %vm177_vm6, %v174_v17, %v176_v16  ;;  %v179_v21 = vsel %vm177_vm6, %v176_v16, %v174_v17 }
  0xbf   :  { %v188_v22 = vmul.f32 %v1276_v7, %v178_v18  ;;  %v189_v8 = vmul.f32 %v1279_v10, %v179_v21  ;;  %v237_v42 = vsel %vm231_vm4, %v1114_v1, %v222_v30  ;;  %v236_v44 = vsel %vm231_vm4, %v1106_v0, %v221_v29 }
  0xc1   :  { %v159_v31 = vpop.permute.xlu1 %158  ;;  %v157_v32 = vpop.permute.xlu0 %156  ;;  %v227_v35 = vrot.slane %v188_v22, 4  ;;  %v228_v38 = vrot.slane %v189_v8, 4 }
  0xc2   :  { %v161_v33 = vsel %vm160_vm7, %v157_v32, %v159_v31  ;;  %v162_v34 = vsel %vm160_vm7, %v159_v31, %v157_v32 }
  0xc3   :  { %v171_v13 = vmul.f32 %v1292_v23, %v161_v33  ;;  %v172_v39 = vmul.f32 %v1295_v26, %v162_v34 }
  0xc5   :  { %v193_v40 = vpop.permute.xlu1 %192  ;;  %v191_v41 = vpop.permute.xlu0 %190  ;;  %v239_v43 = vsel %vm231_vm4, %v172_v39, %v228_v38  ;;  %v238_v45 = vsel %vm231_vm4, %v171_v13, %v227_v35 }
  0xc6   :  { %v196_v46 = vsel %vm194_vm8, %v193_v40, %v191_v41  ;;  %v852_v47 = vpack.c.bf16 %v239_v43, %v237_v42  ;;  %v854_v48 = vpack.c.bf16 %v238_v45, %v236_v44  ;;  %v195_v1 = vsel %vm194_vm8, %v191_v41, %v193_v40 }
  0xc7   :  { %v206_v49 = vmul.f32 %v1307_v14, %v196_v46  ;;  %v205_v52 = vmul.f32 %v1321_v50, %v195_v1 }
  0xc8   :  { %853 = vmatprep.subr.bf16.mxu0 %v852_v47 }
  0xc9   :  { %v496_v51 = vpop.permute.xlu1 %495  ;;  %v494_v0 = vpop.permute.xlu0 %493  ;;  %855 = vmatpush1.bf16.msra.mxu0 %v854_v48 }
  0xca   :  { %840 = vmatprep.subr.msk.mxu0 %vm231_vm4, %v206_v49  ;;  %v497_v58 = vsel %vm92_vm1, %v494_v0, %v496_v51  ;;  %v498_v59 = vsel %vm92_vm1, %v496_v51, %v494_v0 }
  0xcb   :  { %v499_v5 = vmul.f32 %v498_v59, %v1218_v24  ;;  %v500_v6 = vmul.f32 %v497_v58, %v1221_v25 }
  0xcd   :  { %v512_v56 = vpop.permute.xlu1 %511  ;;  %v510_v57 = vpop.permute.xlu0 %509  ;;  %841 = vmatpush1.msk.msra.mxu0 %vm231_vm4, %v205_v52  ;;  %v551_v8 = vrot.slane %v499_v5, 4  ;;  %v552_v29 = vrot.slane %v500_v6, 4 }
  0xce   :  { %842 = vmatmul.mubr.msk.f32.vlgmr.msra.gmra.mrb[0].mxu0 %vm247_vm9, %v1327_v53  ;;  %v513_v60 = vsel %vm126_vm0, %v510_v57, %v512_v56  ;;  %v514_v61 = vsel %vm126_vm0, %v512_v56, %v510_v57 }
  0xcf   :  { %661 = vmatprep.mubr.f32.mxu0 %v1022_v2  ;;  %v515_v15 = vmul.f32 %v514_v61, %v1206_v19  ;;  %v516_v16 = vmul.f32 %v513_v60, %v1209_v20 }
  0xd1   :  { %v488_v62 = vpop.permute.xlu1 %487  ;;  %v486_v63 = vpop.permute.xlu0 %485  ;;  %v557_v32 = vrot.slane %v515_v15, 4  ;;  %v558_v33 = vrot.slane %v516_v16, 4 }
  0xd2   :  { %v489_v11 = vsel %vm75_vm2, %v486_v63, %v488_v62  ;;  %v490_v12 = vsel %vm75_vm2, %v488_v62, %v486_v63 }
  0xd3   :  { %v491_v17 = vmul.f32 %v490_v12, %v1225_v27  ;;  %v492_v18 = vmul.f32 %v489_v11, %v1228_v28 }
  0xd5   :  { %v504_v21 = vpop.permute.xlu1 %503  ;;  %v502_v22 = vpop.permute.xlu0 %501  ;;  %v573_v38 = vsel %vm231_vm4, %v491_v17, %v551_v8  ;;  %v574_v41 = vsel %vm231_vm4, %v492_v18, %v552_v29 }
  0xd6   :  { %v505_v30 = vsel %vm109_vm3, %v502_v22, %v504_v21  ;;  %v506_v31 = vsel %vm109_vm3, %v504_v21, %v502_v22 }
  0xd7   :  { %v507_v34 = vmul.f32 %v506_v31, %v1240_v36  ;;  %v508_v35 = vmul.f32 %v505_v30, %v1243_v37 }
  0xd9   :  { %v575_v13 = vsel %vm231_vm4, %v507_v34, %v557_v32  ;;  %v520_v39 = vpop.permute.xlu1 %519  ;;  %v518_v40 = vpop.permute.xlu0 %517  ;;  %v576_v42 = vsel %vm231_vm4, %v508_v35, %v558_v33 }
  0xda   :  { %v521_v43 = vsel %vm143_vm5, %v518_v40, %v520_v39  ;;  %v522_v44 = vsel %vm143_vm5, %v520_v39, %v518_v40  ;;  %v872_v45 = vpack.c.bf16 %v576_v42, %v574_v41  ;;  %v874_v46 = vpack.c.bf16 %v575_v13, %v573_v38 }
  0xdb   :  { %v523_v47 = vmul.f32 %v521_v43, %v1261_v54  ;;  %v524_v48 = vmul.f32 %v522_v44, %v1264_v55 }
  0xdc   :  { %873 = vmatprep.subr.bf16.mxu0 %v872_v45  ;;  %v395_v45 = vld [vmem:[%s1594_s4] sm:$0xff]  ;;  %s1026_s4 = smov [#allocation8]  }
  0xdd   :  { %v536_v49 = vpop.permute.xlu1 %535  ;;  %v534_v1 = vpop.permute.xlu0 %533  ;;  %875 = vmatpush1.bf16.msra.mxu0 %v874_v46  ;;  %v563_v57 = vrot.slane %v523_v47, 4  ;;  %v564_v58 = vrot.slane %v524_v48, 4  ;;  %s825_s26 = sshll.u32 %s1026_s4, 4  ;;  %s826_s26 = int_to_ptr.vmem [resolvable:$true] %s825_s26 }
  0xde   :  { %v537_v51 = vsel %vm177_vm6, %v534_v1, %v536_v49  ;;  %v538_v0 = vsel %vm177_vm6, %v536_v49, %v534_v1  ;;  %s983_s27 = scalar_lea.vmem %s826_s26, 512  ;;  %p988_p11 = scmp.lt.s32.totalorder %s826_s26, %s826_s26 }
  0xdf   :  { %v539_v52 = vmul.f32 %v537_v51, %v1276_v7  ;;  %v540_v56 = vmul.f32 %v538_v0, %v1279_v10  ;;  %v577_v12 = vsel %vm231_vm4, %v1142_v3, %v563_v57  ;;  %v578_v18 = vsel %vm231_vm4, %v1150_v4, %v564_v58  ;;  %p984_p10 = scmp.ne.s32.totalorder %s826_s26, %s983_s27  ;;  %p989_p12 = scmp.lt.s32.totalorder %s983_s27, %s983_s27 }
  0xe1   :  { %v528_v59 = vpop.permute.xlu1 %527  ;;  %v526_v60 = vpop.permute.xlu0 %525  ;;  %v569_v63 = vrot.slane %v539_v52, 4  ;;  %v570_v5 = vrot.slane %v540_v56, 4  ;;  %p990_p13 = por %p989_p12, %p988_p11 }
  0xe2   :  { %v529_v61 = vsel %vm160_vm7, %v526_v60, %v528_v59  ;;  %v530_v62 = vsel %vm160_vm7, %v528_v59, %v526_v60 }
  0xe3   :  { %v531_v6 = vmul.f32 %v529_v61, %v1292_v23  ;;  %v532_v11 = vmul.f32 %v530_v62, %v1295_v26  ;;  %p991_p0 = pnand %p990_p13, %p984_p10 }
  0xe5   :  { %v579_v15 = vsel %vm231_vm4, %v531_v6, %v569_v63  ;;  %v544_v16 = vpop.permute.xlu1 %543  ;;  %v542_v17 = vpop.permute.xlu0 %541  ;;  %v580_v21 = vsel %vm231_vm4, %v532_v11, %v570_v5 }
  0xe6   :  { %v545_v22 = vsel %vm194_vm8, %v542_v17, %v544_v16  ;;  %v546_v8 = vsel %vm194_vm8, %v544_v16, %v542_v17  ;;  %v876_v29 = vpack.c.bf16 %v580_v21, %v578_v18  ;;  %v878_v30 = vpack.c.bf16 %v579_v15, %v577_v12 }
  0xe7   :  { %v548_v31 = vmul.f32 %v1307_v14, %v546_v8  ;;  %v547_v3 = vmul.f32 %v1321_v50, %v545_v22 }
  0xe8   :  { %877 = vmatprep.subr.bf16.mxu0 %v876_v29 }
  0xe9   :  { %879 = vmatpush1.bf16.msra.mxu0 %v878_v30 }
  0xea   :  { %844 = vmatprep.subr.msk.mxu0 %vm231_vm4, %v548_v31 }
  0xed   :  { %845 = vmatpush1.msk.msra.mxu0 %vm231_vm4, %v547_v3 }
  0xee   :  { %846 = vmatmul.mubr.msk.f32.vlgmr.msra.gmra.mrb[2].mxu0 %vm247_vm9, %v1327_v53 }
  0xf6   :  { %v245_v4 = vpop.permute.xlu0 %244  ;;  %v586_v53 = vpop.permute.xlu1 %585 }
 0x1a1   :  { %v323_v32 = vpop.f32.mrb[0].mxu0 }
 0x1a2   :  { %v324_v33 = vadd.f32 %v323_v32, %v245_v4  ;;  %v325_v34 = vpop.f32.mrb[1].mxu0 }
 0x1a3   :  { %v326_v35 = vadd.f32 %v325_v34, %v245_v4 }
 0x1a4   :  { %v1395_v38 = vmax.f32 %v324_v33, 0.0 }
 0x1a5   :  { %v1397_v13 = vmax.f32 %v326_v35, 0.0 }
 0x1a6   :  { %330 = vrot.lane.b32.xlu1 %v1395_v38, %s1018_s11 }
 0x1a7   :  { %332 = vrot.lane.b32.xlu0 %v1397_v13, %s1018_s11 }
 0x1aa   :  { %338 = vrot.lane.b32.xlu1 %v1395_v38, %s1017_s10 }
 0x1ab   :  { %340 = vrot.lane.b32.xlu0 %v1397_v13, %s1017_s10 }
 0x1ae   :  { %346 = vrot.lane.b32.xlu1 %v1395_v38, %s1019_s3 }
 0x1af   :  { %348 = vrot.lane.b32.xlu0 %v1397_v13, %s1019_s3 }
 0x1b2   :  { %354 = vrot.lane.b32.xlu1 %v1395_v38, %s1016_s9 }
 0x1b3   :  { %356 = vrot.lane.b32.xlu0 %v1397_v13, %s1016_s9 }
 0x1b6   :  { %362 = vrot.lane.b32.xlu1 %v1395_v38, %s1020_s12 }
 0x1b7   :  { %364 = vrot.lane.b32.xlu0 %v1397_v13, %s1020_s12 }
 0x1ba   :  { %370 = vrot.lane.b32.xlu1 %v1395_v38, %s1023_s14 }
 0x1bb   :  { %372 = vrot.lane.b32.xlu0 %v1397_v13, %s1023_s14 }
 0x1be   :  { %378 = vrot.lane.b32.xlu1 %v1395_v38, %s1021_s13 }
 0x1bf   :  { %380 = vrot.lane.b32.xlu0 %v1397_v13, %s1021_s13 }
 0x1c1   :  { %v663_v39 = vpop.f32.mrb[2].mxu0 }
 0x1c2   :  { %v664_v40 = vadd.f32 %v663_v39, %v586_v53  ;;  %v665_v41 = vpop.f32.mrb[3].mxu0  ;;  %386 = vrot.lane.b32.xlu1 %v1395_v38, %s1024_s15 }
 0x1c3   :  { %v666_v42 = vadd.f32 %v665_v41, %v586_v53  ;;  %388 = vrot.lane.b32.xlu0 %v1397_v13, %s1024_s15 }
 0x1c4   :  { %v1431_v43 = vmax.f32 %v664_v40, 0.0 }
 0x1c5   :  { %v1433_v44 = vmax.f32 %v666_v42, 0.0 }
 0x1c6   :  { %670 = vrot.lane.b32.xlu1 %v1431_v43, %s1018_s11 }
 0x1c7   :  { %672 = vrot.lane.b32.xlu0 %v1433_v44, %s1018_s11 }
 0x1ca   :  { %678 = vrot.lane.b32.xlu1 %v1431_v43, %s1017_s10 }
 0x1cb   :  { %680 = vrot.lane.b32.xlu0 %v1433_v44, %s1017_s10 }
 0x1ce   :  { %686 = vrot.lane.b32.xlu1 %v1431_v43, %s1019_s3 }
 0x1cf   :  { %688 = vrot.lane.b32.xlu0 %v1433_v44, %s1019_s3 }
 0x1d2   :  { %694 = vrot.lane.b32.xlu1 %v1431_v43, %s1016_s9 }
 0x1d3   :  { %696 = vrot.lane.b32.xlu0 %v1433_v44, %s1016_s9 }
 0x1d6   :  { %702 = vrot.lane.b32.xlu1 %v1431_v43, %s1020_s12 }
 0x1d7   :  { %704 = vrot.lane.b32.xlu0 %v1433_v44, %s1020_s12 }
 0x1da   :  { %710 = vrot.lane.b32.xlu1 %v1431_v43, %s1023_s14 }
 0x1db   :  { %712 = vrot.lane.b32.xlu0 %v1433_v44, %s1023_s14 }
 0x1de   :  { %718 = vrot.lane.b32.xlu1 %v1431_v43, %s1021_s13 }
 0x1df   :  { %720 = vrot.lane.b32.xlu0 %v1433_v44, %s1021_s13 }
 0x1e2   :  { %726 = vrot.lane.b32.xlu1 %v1431_v43, %s1024_s15 }
 0x1e3   :  { %728 = vrot.lane.b32.xlu0 %v1433_v44, %s1024_s15 }
 0x1e6   :  { %398 = vperm.xlu1 %914, %v395_v45  }
 0x1e7   :  { %738 = vperm.xlu0 %913, %v395_v45  }
 0x218   :  { %v331_v46 = vpop.permute.xlu1 %330 }
 0x219   :  { %v333_v47 = vpop.permute.xlu0 %332 }
 0x21a   :  { %v334_v48 = vsel %vm75_vm2, %v331_v46, %v333_v47  ;;  %v335_v49 = vsel %vm75_vm2, %v333_v47, %v331_v46 }
 0x21b   :  { %v336_v56 = vmul.f32 %v335_v49, %v1225_v27  ;;  %v337_v58 = vmul.f32 %v334_v48, %v1228_v28 }
 0x21c   :  { %v339_v1 = vpop.permute.xlu1 %338 }
 0x21d   :  { %v341_v51 = vpop.permute.xlu0 %340 }
 0x21e   :  { %v342_v0 = vsel %vm92_vm1, %v339_v1, %v341_v51  ;;  %v343_v52 = vsel %vm92_vm1, %v341_v51, %v339_v1 }
 0x21f   :  { %v344_v57 = vmul.f32 %v343_v52, %v1218_v24  ;;  %v345_v59 = vmul.f32 %v342_v0, %v1221_v25 }
 0x220   :  { %v347_v60 = vpop.permute.xlu1 %346 }
 0x221   :  { %v349_v61 = vpop.permute.xlu0 %348  ;;  %v856_v62 = vpack.c.bf16 %v345_v59, %v337_v58  ;;  %v858_v63 = vpack.c.bf16 %v344_v57, %v336_v56 }
 0x222   :  { %v350_v5 = vsel %vm109_vm3, %v347_v60, %v349_v61  ;;  %v351_v6 = vsel %vm109_vm3, %v349_v61, %v347_v60 }
 0x223   :  { %857 = vmatprep.subr.bf16.mxu1 %v856_v62  ;;  %v352_v17 = vmul.f32 %v351_v6, %v1240_v36  ;;  %v353_v18 = vmul.f32 %v350_v5, %v1243_v37  ;;  %v1520_v62 = vld [vmem:[#allocation7] sm:$0xff] }
 0x224   :  { %859 = vmatpush1.bf16.msra.mxu1 %v858_v63  ;;  %v355_v11 = vpop.permute.xlu1 %354 }
 0x225   :  { %v357_v12 = vpop.permute.xlu0 %356 }
 0x226   :  { %v358_v15 = vsel %vm126_vm0, %v355_v11, %v357_v12  ;;  %v359_v16 = vsel %vm126_vm0, %v357_v12, %v355_v11 }
 0x227   :  { %v360_v21 = vmul.f32 %v359_v16, %v1206_v19  ;;  %v361_v22 = vmul.f32 %v358_v15, %v1209_v20 }
 0x228   :  { %v363_v8 = vpop.permute.xlu1 %362 }
 0x229   :  { %v365_v29 = vpop.permute.xlu0 %364  ;;  %v860_v30 = vpack.c.bf16 %v361_v22, %v353_v18  ;;  %v862_v31 = vpack.c.bf16 %v360_v21, %v352_v17 }
 0x22a   :  { %v366_v3 = vsel %vm143_vm5, %v363_v8, %v365_v29  ;;  %v367_v4 = vsel %vm143_vm5, %v365_v29, %v363_v8 }
 0x22b   :  { %v368_v32 = vmul.f32 %v366_v3, %v1261_v54  ;;  %v369_v33 = vmul.f32 %v367_v4, %v1264_v55  ;;  %861 = vmatprep.subr.bf16.mxu1 %v860_v30 }
 0x22c   :  { %863 = vmatpush1.bf16.msra.mxu1 %v862_v31  ;;  %v371_v34 = vpop.permute.xlu1 %370 }
 0x22d   :  { %v373_v35 = vpop.permute.xlu0 %372  ;;  %v864_v53 = vpack.c.bf16 %v369_v33, %v1397_v13  ;;  %v866_v39 = vpack.c.bf16 %v368_v32, %v1395_v38 }
 0x22e   :  { %v374_v40 = vsel %vm160_vm7, %v371_v34, %v373_v35  ;;  %v375_v41 = vsel %vm160_vm7, %v373_v35, %v371_v34 }
 0x22f   :  { %865 = vmatprep.subr.bf16.mxu1 %v864_v53  ;;  %v376_v13 = vmul.f32 %v374_v40, %v1292_v23  ;;  %v377_v38 = vmul.f32 %v375_v41, %v1295_v26 }
 0x230   :  { %867 = vmatpush1.bf16.msra.mxu1 %v866_v39  ;;  %v379_v42 = vpop.permute.xlu1 %378 }
 0x231   :  { %v381_v45 = vpop.permute.xlu0 %380 }
 0x232   :  { %v382_v46 = vsel %vm177_vm6, %v379_v42, %v381_v45  ;;  %v383_v47 = vsel %vm177_vm6, %v381_v45, %v379_v42 }
 0x233   :  { %v384_v48 = vmul.f32 %v382_v46, %v1276_v7  ;;  %v385_v49 = vmul.f32 %v383_v47, %v1279_v10 }
 0x234   :  { %v387_v1 = vpop.permute.xlu1 %386 }
 0x235   :  { %v389_v51 = vpop.permute.xlu0 %388  ;;  %v868_v0 = vpack.c.bf16 %v385_v49, %v377_v38  ;;  %v870_v52 = vpack.c.bf16 %v384_v48, %v376_v13 }
 0x236   :  { %v391_v56 = vsel %vm194_vm8, %v389_v51, %v387_v1  ;;  %v390_v57 = vsel %vm194_vm8, %v387_v1, %v389_v51 }
 0x237   :  { %v393_v58 = vmul.f32 %v1307_v14, %v391_v56  ;;  %869 = vmatprep.subr.bf16.mxu1 %v868_v0  ;;  %v392_v61 = vmul.f32 %v1321_v50, %v390_v57 }
 0x238   :  { %871 = vmatpush1.bf16.msra.mxu1 %v870_v52  ;;  %v671_v59 = vpop.permute.xlu1 %670 }
 0x239   :  { %v673_v60 = vpop.permute.xlu0 %672  ;;  %421 = vmatprep.subr.mxu1 %v393_v58 }
 0x23a   :  { %v674_v63 = vsel %vm75_vm2, %v671_v59, %v673_v60  ;;  %v675_v5 = vsel %vm75_vm2, %v673_v60, %v671_v59 }
 0x23b   :  { %v676_v16 = vmul.f32 %v675_v5, %v1225_v27  ;;  %v677_v17 = vmul.f32 %v674_v63, %v1228_v28 }
 0x23c   :  { %422 = vmatpush1.msra.mxu1 %v392_v61  ;;  %v679_v6 = vpop.permute.xlu1 %678 }
 0x23d   :  { %v681_v11 = vpop.permute.xlu0 %680  ;;  %843 = vmatmul.mubr.msk.f32.vlgmr.msra.gmra.mrb[0].mxu1 %vm401_vm10, %v1520_v62 }
 0x23e   :  { %v682_v12 = vsel %vm92_vm1, %v679_v6, %v681_v11  ;;  %v683_v15 = vsel %vm92_vm1, %v681_v11, %v679_v6  ;;  %808 = vmatprep.mubr.f32.mxu1 %v1022_v2 }
 0x23f   :  { %v684_v18 = vmul.f32 %v683_v15, %v1218_v24  ;;  %v685_v21 = vmul.f32 %v682_v12, %v1221_v25 }
 0x240   :  { %v687_v22 = vpop.permute.xlu1 %686 }
 0x241   :  { %v882_v8 = vpack.c.bf16 %v684_v18, %v676_v16  ;;  %v689_v29 = vpop.permute.xlu0 %688  ;;  %v880_v30 = vpack.c.bf16 %v685_v21, %v677_v17 }
 0x242   :  { %v690_v31 = vsel %vm109_vm3, %v687_v22, %v689_v29  ;;  %v691_v3 = vsel %vm109_vm3, %v689_v29, %v687_v22 }
 0x243   :  { %881 = vmatprep.subr.bf16.mxu1 %v880_v30  ;;  %v692_v25 = vmul.f32 %v691_v3, %v1240_v36  ;;  %v693_v4 = vmul.f32 %v690_v31, %v1243_v37 }
 0x244   :  { %883 = vmatpush1.bf16.msra.mxu1 %v882_v8  ;;  %v695_v2 = vpop.permute.xlu1 %694 }
 0x245   :  { %v697_v27 = vpop.permute.xlu0 %696 }
 0x246   :  { %v698_v28 = vsel %vm126_vm0, %v695_v2, %v697_v27  ;;  %v699_v24 = vsel %vm126_vm0, %v697_v27, %v695_v2 }
 0x247   :  { %v700_v32 = vmul.f32 %v699_v24, %v1206_v19  ;;  %v701_v33 = vmul.f32 %v698_v28, %v1209_v20 }
 0x248   :  { %v703_v34 = vpop.permute.xlu1 %702 }
 0x249   :  { %v886_v35 = vpack.c.bf16 %v700_v32, %v692_v25  ;;  %v705_v53 = vpop.permute.xlu0 %704  ;;  %v884_v39 = vpack.c.bf16 %v701_v33, %v693_v4 }
 0x24a   :  { %v706_v40 = vsel %vm143_vm5, %v703_v34, %v705_v53  ;;  %v707_v41 = vsel %vm143_vm5, %v705_v53, %v703_v34 }
 0x24b   :  { %v708_v42 = vmul.f32 %v706_v40, %v1261_v54  ;;  %v709_v36 = vmul.f32 %v707_v41, %v1264_v55  ;;  %885 = vmatprep.subr.bf16.mxu1 %v884_v39 }
 0x24c   :  { %887 = vmatpush1.bf16.msra.mxu1 %v886_v35  ;;  %v711_v37 = vpop.permute.xlu1 %710 }
 0x24d   :  { %v890_v19 = vpack.c.bf16 %v708_v42, %v1431_v43  ;;  %v713_v20 = vpop.permute.xlu0 %712  ;;  %v888_v45 = vpack.c.bf16 %v709_v36, %v1433_v44 }
 0x24e   :  { %v714_v46 = vsel %vm160_vm7, %v711_v37, %v713_v20  ;;  %v715_v47 = vsel %vm160_vm7, %v713_v20, %v711_v37 }
 0x24f   :  { %889 = vmatprep.subr.bf16.mxu1 %v888_v45  ;;  %v716_v43 = vmul.f32 %v714_v46, %v1292_v23  ;;  %v717_v44 = vmul.f32 %v715_v47, %v1295_v26 }
 0x250   :  { %891 = vmatpush1.bf16.msra.mxu1 %v890_v19  ;;  %v719_v13 = vpop.permute.xlu1 %718 }
 0x251   :  { %v721_v54 = vpop.permute.xlu0 %720 }
 0x252   :  { %v722_v55 = vsel %vm177_vm6, %v719_v13, %v721_v54  ;;  %v723_v38 = vsel %vm177_vm6, %v721_v54, %v719_v13 }
 0x253   :  { %v724_v48 = vmul.f32 %v722_v55, %v1276_v7  ;;  %v725_v49 = vmul.f32 %v723_v38, %v1279_v10 }
 0x254   :  { %v727_v1 = vpop.permute.xlu1 %726 }
 0x255   :  { %v894_v51 = vpack.c.bf16 %v724_v48, %v716_v43  ;;  %v729_v0 = vpop.permute.xlu0 %728  ;;  %v892_v52 = vpack.c.bf16 %v725_v49, %v717_v44 }
 0x256   :  { %v731_v56 = vsel %vm194_vm8, %v729_v0, %v727_v1  ;;  %v730_v57 = vsel %vm194_vm8, %v727_v1, %v729_v0 }
 0x257   :  { %v733_v58 = vmul.f32 %v1307_v14, %v731_v56  ;;  %893 = vmatprep.subr.bf16.mxu1 %v892_v52  ;;  %v732_v23 = vmul.f32 %v1321_v50, %v730_v57 }
 0x258   :  { %895 = vmatpush1.bf16.msra.mxu1 %v894_v51 }
 0x259   :  { %760 = vmatprep.subr.mxu1 %v733_v58 }
 0x25c   :  { %761 = vmatpush1.msra.mxu1 %v732_v23 }
 0x25d   :  { %847 = vmatmul.mubr.msk.f32.vlgmr.msra.gmra.mrb[2].mxu1 %vm401_vm10, %v1520_v62 }
 0x265   :  { %v399_v7 = vpop.permute.xlu1 %398 }
 0x266   :  { %v739_v9 = vpop.permute.xlu0 %738 }
 0x310   :  { %v471_v10 = vpop.f32.mrb[0].mxu1 }
 0x311   :  { %v472_v26 = vadd.f32 %v471_v10, %v399_v7  ;;  %v473_v59 = vpop.f32.mrb[1].mxu1 }
 0x312   :  { %v474_v60 = vadd.f32 %v473_v59, %v399_v7 }
 0x313   :  { %v476_v61 = vmax.f32 %v472_v26, 0.0 }
 0x314   :  { %v477_v63 = vmax.f32 %v474_v60, 0.0 }
 0x315   :  { %478 = vst [vmem:[#allocation8] sm:$0xff] %v476_v61 }
 0x316   :  { %479 = vst [vmem:[#allocation8 + $0x8] sm:$0xff] %v477_v63 }
 0x330   :  { %v810_v14 = vpop.f32.mrb[2].mxu1 }
 0x331   :  { %v811_v5 = vadd.f32 %v810_v14, %v739_v9  ;;  %v812_v6 = vpop.f32.mrb[3].mxu1 }
 0x332   :  { %v813_v50 = vadd.f32 %v812_v6, %v739_v9 }
 0x333   :  { %v815_v11 = vmax.f32 %v811_v5, 0.0 }
 0x334   :  { %v816_v12 = vmax.f32 %v813_v50, 0.0 }
 0x335   :  { %818 = vst [vmem:[#allocation8 + $0x10] sm:$0xff] %v815_v11 }
 0x336   :  { %819 = vst [vmem:[#allocation8 + $0x18] sm:$0xff] %v816_v12 }
 0x337   :  { %994 = shalt.err (!%p991_p0)
}
 0x338   :  { %s995_s30 = scalar_lea.hbm %s1596_s6, 512 }
 0x339   :  { %p996_p1 = scmp.ne.s32.totalorder %s1596_s6, %s995_s30  ;;  %p999_p2 = scmp.lt.u32.totalorder %s995_s30, %s1596_s6 }
 0x33b   :  { %p1001_p3 = pnand %p999_p2, %p996_p1 }
 0x33d   :  { %1004 = shalt.err (!%p1001_p3)
}
 0x33e   :  { %s1027_s9 = smov 256  }
 0x33f   :  { %831 = dma.vmem_to_hbm [thread:$0]  %s826_s26, 512, %s1596_s6, [#allocation4], %s1027_s9, %s1027_s9, %s1017_s10  }
 0x340   :  { %1009 = dma.done.wait [#allocation4], 512  }
 0x341   :  { %1010 = vsyncadd [#allocation4], 4294966784 }
 0x342   :  { %835 = vsyncpa [#allocation3], 1 }
 0x343   :  { %836 = vsyncpa [#allocation6], 1 }
 0x344   :  { %837 = vsyncpa [#allocation4], 1 }

</bundles_post_ra>
